<compile_context>
chip_gen: v7x
topology: tpu7x:2x2x1
jax: 0.10.0
libtpu: 0.0.40
codegen_flags: <defaults>
</compile_context>

<pallas_src>
import jax
import jax.numpy as jnp
from jax.experimental import pallas as pl
from jax.experimental.pallas import tpu as pltpu
import numpy as np


def lstm_classifier_kernel(x_ref, w_ihT_ref, w_hhT_ref, b_ref,
                           w_clsT_ref, b_cls_ref, out_ref):
    """Full LSTM recurrence + Linear + softmax in one invocation.

    x_ref:      (S*B, I)   time-major inputs, flattened
    w_ihT_ref:  (I, 4H)    input->gate weights, pre-transposed; g-gate cols *2
    w_hhT_ref:  (H, 4H)    hidden->gate weights, pre-transposed; g-gate cols *2
    b_ref:      (1, 4H)    b_ih + b_hh; g-gate entries *2
    w_clsT_ref: (H, L)     classifier weights, pre-transposed
    b_cls_ref:  (1, L)
    out_ref:    (B, L)     softmax probabilities
    """
    B, L = out_ref.shape
    S = x_ref.shape[0] // B
    G = w_ihT_ref.shape[1]          # 4H (lane-dense gate width)
    H = G // 4

    # Hoisted input projection: one MXU pass covers every time step.  The
    # g-gate columns of W_ih^T / W_hh^T / b are pre-scaled by 2 so that
    # tanh(g_pre) == 2*sigmoid(2*g_pre) - 1 can be rebuilt from the single
    # full-width sigmoid inside the loop.
    gx = (jnp.dot(x_ref[...], w_ihT_ref[...],
                  preferred_element_type=jnp.float32)
          + b_ref[...])                                # (S*B, 4H)

    w_hhT = w_hhT_ref[...]                             # (H, 4H), reused S times

    # Compact state: only the H meaningful lanes are materialized.
    h = jnp.zeros((B, H), jnp.float32)
    c = jnp.zeros((B, H), jnp.float32)

    # Statically unrolled recurrence (S is small); every slice offset is a
    # compile-time constant; each step reads one tile-aligned (B, 4H) block.
    # Per-step MXU work is now an (B, 32) x (32, 4H) dot instead of K = 128.
    for t in range(S):
        gates = gx[t * B:(t + 1) * B, :] + jnp.dot(
            h, w_hhT, preferred_element_type=jnp.float32)     # (B, 4H)

        # Single full-vreg EUP activation.  PyTorch gate order [i, f, g, o]
        # along the 4H lane dim.
        sig = jax.nn.sigmoid(gates)
        i_g = sig[:, 0 * H:1 * H]
        f_g = sig[:, 1 * H:2 * H]
        g_g = 2.0 * sig[:, 2 * H:3 * H] - 1.0   # tanh of the unscaled g preact
        o_g = sig[:, 3 * H:4 * H]

        c = f_g * c + i_g * g_g                 # (B, H) quarter-width VPU
        h = o_g * jnp.tanh(c)                   # quarter-width EUP

    # Classifier + softmax on the final hidden state.
    logits = (jnp.dot(h, w_clsT_ref[...], preferred_element_type=jnp.float32)
              + b_cls_ref[...])                        # (B, L)
    m = jnp.max(logits, axis=1, keepdims=True)
    e = jnp.exp(logits - m)
    denom = jnp.sum(e, axis=1, keepdims=True)
    out_ref[...] = e * pl.reciprocal(denom, approx=False)


def prepare_params(w_ih, w_hh, b_ih, b_hh, w_cls, b_cls):
    """One-time weight massaging (kept off the per-call hot path).

    Pre-transposes weights (contraction dim on sublanes, 4H on lanes) and
    scales the g-gate rows/entries by 2 so the kernel only needs one sigmoid
    per step.
    """
    G = w_ih.shape[0]          # 4H
    H = G // 4
    L = w_cls.shape[0]

    scale = jnp.ones((G, 1), jnp.float32).at[2 * H:3 * H, :].set(2.0)
    w_ihT = (w_ih.astype(jnp.float32) * scale).T          # (I, 4H)
    w_hhT = (w_hh.astype(jnp.float32) * scale).T          # (H, 4H)
    b_comb = ((b_ih + b_hh).astype(jnp.float32)
              * scale[:, 0]).reshape(1, G)                # (1, 4H)
    w_clsT = w_cls.T.astype(jnp.float32)                  # (H, L)
    b_cls2 = b_cls.reshape(1, L).astype(jnp.float32)      # (1, L)
    return w_ihT, w_hhT, b_comb, w_clsT, b_cls2


@jax.jit
def gru_rnn_forward(x_bsi, params):
    """x_bsi: (batch, seq, inputSize) float32, params from prepare_params()
    -> (batch, numLabels) softmax probabilities."""
    w_ihT, w_hhT, b_comb, w_clsT, b_cls2 = params
    B, S, I = x_bsi.shape
    L = w_clsT.shape[1]

    # Time-major, flattened: the hoisted input projection becomes one matmul
    # and each per-step slice is a contiguous, tile-aligned (B, 4H) block.
    x_sb = jnp.transpose(x_bsi.astype(jnp.float32), (1, 0, 2)).reshape(S * B, I)

    vmem = pltpu.MemorySpace.VMEM
    # Whole problem is a few tens of KiB: one invocation, everything VMEM
    # resident, no grid / pipelining needed.  (For large S*B, switch to a
    # time-chunked "arbitrary" grid axis with h/c in VMEM scratch; for large B
    # on v7x add a leading "parallel" batch axis so both TensorCores are used.)
    return pl.pallas_call(
        lstm_classifier_kernel,
        out_shape=jax.ShapeDtypeStruct((B, L), jnp.float32),
        in_specs=[pl.BlockSpec(memory_space=vmem)] * 6,
        out_specs=pl.BlockSpec(memory_space=vmem),
    )(x_sb, w_ihT, w_hhT, b_comb, w_clsT, b_cls2)


def reference_forward(x_bsi, w_ih, w_hh, b_ih, b_hh, w_cls, b_cls):
    """Pure-JAX reference matching PyTorch nn.LSTM + Linear + softmax."""
    B, S, I = x_bsi.shape
    H = w_hh.shape[1]
    h = jnp.zeros((B, H), jnp.float32)
    c = jnp.zeros((B, H), jnp.float32)
    for t in range(S):
        x_t = x_bsi[:, t, :]
        gates = x_t @ w_ih.T + b_ih + h @ w_hh.T + b_hh
        i_g = jax.nn.sigmoid(gates[:, 0 * H:1 * H])
        f_g = jax.nn.sigmoid(gates[:, 1 * H:2 * H])
        g_g = jnp.tanh(gates[:, 2 * H:3 * H])
        o_g = jax.nn.sigmoid(gates[:, 3 * H:4 * H])
        c = f_g * c + i_g * g_g
        h = o_g * jnp.tanh(c)
    logits = h @ w_cls.T + b_cls
    return jax.nn.softmax(logits, axis=1)


if __name__ == "__main__":
    # Small shapes consistent with the module's forward.
    batch, seq, input_size, hidden_size, num_labels = 8, 8, 16, 32, 2

    key = jax.random.PRNGKey(0)
    ks = jax.random.split(key, 7)
    bound = 1.0 / np.sqrt(hidden_size)   # PyTorch default LSTM/Linear init scale

    x = jax.random.normal(ks[0], (batch, seq, input_size), jnp.float32)
    w_ih = jax.random.uniform(ks[1], (4 * hidden_size, input_size),
                              jnp.float32, -bound, bound)
    w_hh = jax.random.uniform(ks[2], (4 * hidden_size, hidden_size),
                              jnp.float32, -bound, bound)
    b_ih = jax.random.uniform(ks[3], (4 * hidden_size,), jnp.float32, -bound, bound)
    b_hh = jax.random.uniform(ks[4], (4 * hidden_size,), jnp.float32, -bound, bound)
    w_cls = jax.random.uniform(ks[5], (num_labels, hidden_size),
                               jnp.float32, -bound, bound)
    b_cls = jax.random.uniform(ks[6], (num_labels,), jnp.float32, -bound, bound)

    # One-time weight prep, off the steady-state path.
    params = jax.tree_util.tree_map(
        jax.block_until_ready,
        prepare_params(w_ih, w_hh, b_ih, b_hh, w_cls, b_cls))

    probs = gru_rnn_forward(x, params)
    probs = jax.block_until_ready(probs)

    ref = reference_forward(x, w_ih, w_hh, b_ih, b_hh, w_cls, b_cls)
    np.testing.assert_allclose(np.asarray(probs), np.asarray(ref),
                               rtol=1e-5, atol=1e-5)

    print("KERNEL_OK")
</pallas_src>

<mosaic_0001>
module attributes {stable_mosaic.version = 11 : i64} {
  func.func @lstm_classifier_kernel(%arg0: memref<64x16xf32, #tpu.memory_space<vmem>>, %arg1: memref<16x128xf32, #tpu.memory_space<vmem>>, %arg2: memref<32x128xf32, #tpu.memory_space<vmem>>, %arg3: memref<1x128xf32, #tpu.memory_space<vmem>>, %arg4: memref<32x2xf32, #tpu.memory_space<vmem>>, %arg5: memref<1x2xf32, #tpu.memory_space<vmem>>, %arg6: memref<8x2xf32, #tpu.memory_space<vmem>>) attributes {dimension_semantics = [], scalar_prefetch = 0 : i64, scratch_operands = 0 : i64, tpu.core_type = #tpu.core_type<tc>} {
    %c0 = arith.constant 0 : index
    %c0_0 = arith.constant 0 : index
    %0 = vector.load %arg0[%c0, %c0_0] : memref<64x16xf32, #tpu.memory_space<vmem>>, vector<64x16xf32>
    %c0_1 = arith.constant 0 : index
    %c0_2 = arith.constant 0 : index
    %1 = vector.load %arg1[%c0_1, %c0_2] : memref<16x128xf32, #tpu.memory_space<vmem>>, vector<16x128xf32>
    %cst = arith.constant dense<0.000000e+00> : vector<64x128xf32>
    %2 = tpu.matmul %0, %1, %cst {dimension_numbers = #tpu.dot_dimension_numbers<[1], [0], [0], [1], [0, 0, 1, 1], [], []>} : vector<64x16xf32>, vector<16x128xf32>, vector<64x128xf32> -> vector<64x128xf32>
    %c0_3 = arith.constant 0 : index
    %c0_4 = arith.constant 0 : index
    %3 = vector.load %arg3[%c0_3, %c0_4] : memref<1x128xf32, #tpu.memory_space<vmem>>, vector<1x128xf32>
    %4 = vector.broadcast %3 : vector<1x128xf32> to vector<64x128xf32>
    %5 = arith.addf %2, %4 : vector<64x128xf32>
    %c0_5 = arith.constant 0 : index
    %c0_6 = arith.constant 0 : index
    %6 = vector.load %arg2[%c0_5, %c0_6] : memref<32x128xf32, #tpu.memory_space<vmem>>, vector<32x128xf32>
    %cst_7 = arith.constant 0.000000e+00 : f32
    %7 = vector.broadcast %cst_7 : f32 to vector<8x32xf32>
    %cst_8 = arith.constant 0.000000e+00 : f32
    %8 = vector.broadcast %cst_8 : f32 to vector<8x32xf32>
    %9 = vector.extract_strided_slice %5 {offsets = [0, 0], sizes = [8, 128], strides = [1, 1]} : vector<64x128xf32> to vector<8x128xf32>
    %cst_9 = arith.constant dense<0.000000e+00> : vector<8x128xf32>
    %10 = tpu.matmul %7, %6, %cst_9 {dimension_numbers = #tpu.dot_dimension_numbers<[1], [0], [0], [1], [0, 0, 1, 1], [], []>} : vector<8x32xf32>, vector<32x128xf32>, vector<8x128xf32> -> vector<8x128xf32>
    %11 = arith.addf %9, %10 : vector<8x128xf32>
    %12 = arith.negf %11 : vector<8x128xf32>
    %13 = math.exp %12 : vector<8x128xf32>
    %cst_10 = arith.constant 1.000000e+00 : f32
    %14 = vector.broadcast %cst_10 : f32 to vector<8x128xf32>
    %15 = arith.addf %14, %13 : vector<8x128xf32>
    %16 = arith.divf %14, %15 : vector<8x128xf32>
    %17 = vector.extract_strided_slice %16 {offsets = [0, 0], sizes = [8, 32], strides = [1, 1]} : vector<8x128xf32> to vector<8x32xf32>
    %18 = vector.extract_strided_slice %16 {offsets = [0, 32], sizes = [8, 32], strides = [1, 1]} : vector<8x128xf32> to vector<8x32xf32>
    %19 = vector.extract_strided_slice %16 {offsets = [0, 64], sizes = [8, 32], strides = [1, 1]} : vector<8x128xf32> to vector<8x32xf32>
    %cst_11 = arith.constant 2.000000e+00 : f32
    %20 = vector.broadcast %cst_11 : f32 to vector<8x32xf32>
    %21 = arith.mulf %20, %19 : vector<8x32xf32>
    %cst_12 = arith.constant 1.000000e+00 : f32
    %22 = vector.broadcast %cst_12 : f32 to vector<8x32xf32>
    %23 = arith.subf %21, %22 : vector<8x32xf32>
    %24 = vector.extract_strided_slice %16 {offsets = [0, 96], sizes = [8, 32], strides = [1, 1]} : vector<8x128xf32> to vector<8x32xf32>
    %25 = arith.mulf %18, %8 : vector<8x32xf32>
    %26 = arith.mulf %17, %23 : vector<8x32xf32>
    %27 = arith.addf %25, %26 : vector<8x32xf32>
    %28 = math.tanh %27 : vector<8x32xf32>
    %29 = arith.mulf %24, %28 : vector<8x32xf32>
    %30 = vector.extract_strided_slice %5 {offsets = [8, 0], sizes = [8, 128], strides = [1, 1]} : vector<64x128xf32> to vector<8x128xf32>
    %cst_13 = arith.constant dense<0.000000e+00> : vector<8x128xf32>
    %31 = tpu.matmul %29, %6, %cst_13 {dimension_numbers = #tpu.dot_dimension_numbers<[1], [0], [0], [1], [0, 0, 1, 1], [], []>} : vector<8x32xf32>, vector<32x128xf32>, vector<8x128xf32> -> vector<8x128xf32>
    %32 = arith.addf %30, %31 : vector<8x128xf32>
    %33 = arith.negf %32 : vector<8x128xf32>
    %34 = math.exp %33 : vector<8x128xf32>
    %cst_14 = arith.constant 1.000000e+00 : f32
    %35 = vector.broadcast %cst_14 : f32 to vector<8x128xf32>
    %36 = arith.addf %35, %34 : vector<8x128xf32>
    %37 = arith.divf %35, %36 : vector<8x128xf32>
    %38 = vector.extract_strided_slice %37 {offsets = [0, 0], sizes = [8, 32], strides = [1, 1]} : vector<8x128xf32> to vector<8x32xf32>
    %39 = vector.extract_strided_slice %37 {offsets = [0, 32], sizes = [8, 32], strides = [1, 1]} : vector<8x128xf32> to vector<8x32xf32>
    %40 = vector.extract_strided_slice %37 {offsets = [0, 64], sizes = [8, 32], strides = [1, 1]} : vector<8x128xf32> to vector<8x32xf32>
    %cst_15 = arith.constant 2.000000e+00 : f32
    %41 = vector.broadcast %cst_15 : f32 to vector<8x32xf32>
    %42 = arith.mulf %41, %40 : vector<8x32xf32>
    %cst_16 = arith.constant 1.000000e+00 : f32
    %43 = vector.broadcast %cst_16 : f32 to vector<8x32xf32>
    %44 = arith.subf %42, %43 : vector<8x32xf32>
    %45 = vector.extract_strided_slice %37 {offsets = [0, 96], sizes = [8, 32], strides = [1, 1]} : vector<8x128xf32> to vector<8x32xf32>
    %46 = arith.mulf %39, %27 : vector<8x32xf32>
    %47 = arith.mulf %38, %44 : vector<8x32xf32>
    %48 = arith.addf %46, %47 : vector<8x32xf32>
    %49 = math.tanh %48 : vector<8x32xf32>
    %50 = arith.mulf %45, %49 : vector<8x32xf32>
    %51 = vector.extract_strided_slice %5 {offsets = [16, 0], sizes = [8, 128], strides = [1, 1]} : vector<64x128xf32> to vector<8x128xf32>
    %cst_17 = arith.constant dense<0.000000e+00> : vector<8x128xf32>
    %52 = tpu.matmul %50, %6, %cst_17 {dimension_numbers = #tpu.dot_dimension_numbers<[1], [0], [0], [1], [0, 0, 1, 1], [], []>} : vector<8x32xf32>, vector<32x128xf32>, vector<8x128xf32> -> vector<8x128xf32>
    %53 = arith.addf %51, %52 : vector<8x128xf32>
    %54 = arith.negf %53 : vector<8x128xf32>
    %55 = math.exp %54 : vector<8x128xf32>
    %cst_18 = arith.constant 1.000000e+00 : f32
    %56 = vector.broadcast %cst_18 : f32 to vector<8x128xf32>
    %57 = arith.addf %56, %55 : vector<8x128xf32>
    %58 = arith.divf %56, %57 : vector<8x128xf32>
    %59 = vector.extract_strided_slice %58 {offsets = [0, 0], sizes = [8, 32], strides = [1, 1]} : vector<8x128xf32> to vector<8x32xf32>
    %60 = vector.extract_strided_slice %58 {offsets = [0, 32], sizes = [8, 32], strides = [1, 1]} : vector<8x128xf32> to vector<8x32xf32>
    %61 = vector.extract_strided_slice %58 {offsets = [0, 64], sizes = [8, 32], strides = [1, 1]} : vector<8x128xf32> to vector<8x32xf32>
    %cst_19 = arith.constant 2.000000e+00 : f32
    %62 = vector.broadcast %cst_19 : f32 to vector<8x32xf32>
    %63 = arith.mulf %62, %61 : vector<8x32xf32>
    %cst_20 = arith.constant 1.000000e+00 : f32
    %64 = vector.broadcast %cst_20 : f32 to vector<8x32xf32>
    %65 = arith.subf %63, %64 : vector<8x32xf32>
    %66 = vector.extract_strided_slice %58 {offsets = [0, 96], sizes = [8, 32], strides = [1, 1]} : vector<8x128xf32> to vector<8x32xf32>
    %67 = arith.mulf %60, %48 : vector<8x32xf32>
    %68 = arith.mulf %59, %65 : vector<8x32xf32>
    %69 = arith.addf %67, %68 : vector<8x32xf32>
    %70 = math.tanh %69 : vector<8x32xf32>
    %71 = arith.mulf %66, %70 : vector<8x32xf32>
    %72 = vector.extract_strided_slice %5 {offsets = [24, 0], sizes = [8, 128], strides = [1, 1]} : vector<64x128xf32> to vector<8x128xf32>
    %cst_21 = arith.constant dense<0.000000e+00> : vector<8x128xf32>
    %73 = tpu.matmul %71, %6, %cst_21 {dimension_numbers = #tpu.dot_dimension_numbers<[1], [0], [0], [1], [0, 0, 1, 1], [], []>} : vector<8x32xf32>, vector<32x128xf32>, vector<8x128xf32> -> vector<8x128xf32>
    %74 = arith.addf %72, %73 : vector<8x128xf32>
    %75 = arith.negf %74 : vector<8x128xf32>
    %76 = math.exp %75 : vector<8x128xf32>
    %cst_22 = arith.constant 1.000000e+00 : f32
    %77 = vector.broadcast %cst_22 : f32 to vector<8x128xf32>
    %78 = arith.addf %77, %76 : vector<8x128xf32>
    %79 = arith.divf %77, %78 : vector<8x128xf32>
    %80 = vector.extract_strided_slice %79 {offsets = [0, 0], sizes = [8, 32], strides = [1, 1]} : vector<8x128xf32> to vector<8x32xf32>
    %81 = vector.extract_strided_slice %79 {offsets = [0, 32], sizes = [8, 32], strides = [1, 1]} : vector<8x128xf32> to vector<8x32xf32>
    %82 = vector.extract_strided_slice %79 {offsets = [0, 64], sizes = [8, 32], strides = [1, 1]} : vector<8x128xf32> to vector<8x32xf32>
    %cst_23 = arith.constant 2.000000e+00 : f32
    %83 = vector.broadcast %cst_23 : f32 to vector<8x32xf32>
    %84 = arith.mulf %83, %82 : vector<8x32xf32>
    %cst_24 = arith.constant 1.000000e+00 : f32
    %85 = vector.broadcast %cst_24 : f32 to vector<8x32xf32>
    %86 = arith.subf %84, %85 : vector<8x32xf32>
    %87 = vector.extract_strided_slice %79 {offsets = [0, 96], sizes = [8, 32], strides = [1, 1]} : vector<8x128xf32> to vector<8x32xf32>
    %88 = arith.mulf %81, %69 : vector<8x32xf32>
    %89 = arith.mulf %80, %86 : vector<8x32xf32>
    %90 = arith.addf %88, %89 : vector<8x32xf32>
    %91 = math.tanh %90 : vector<8x32xf32>
    %92 = arith.mulf %87, %91 : vector<8x32xf32>
    %93 = vector.extract_strided_slice %5 {offsets = [32, 0], sizes = [8, 128], strides = [1, 1]} : vector<64x128xf32> to vector<8x128xf32>
    %cst_25 = arith.constant dense<0.000000e+00> : vector<8x128xf32>
    %94 = tpu.matmul %92, %6, %cst_25 {dimension_numbers = #tpu.dot_dimension_numbers<[1], [0], [0], [1], [0, 0, 1, 1], [], []>} : vector<8x32xf32>, vector<32x128xf32>, vector<8x128xf32> -> vector<8x128xf32>
    %95 = arith.addf %93, %94 : vector<8x128xf32>
    %96 = arith.negf %95 : vector<8x128xf32>
    %97 = math.exp %96 : vector<8x128xf32>
    %cst_26 = arith.constant 1.000000e+00 : f32
    %98 = vector.broadcast %cst_26 : f32 to vector<8x128xf32>
    %99 = arith.addf %98, %97 : vector<8x128xf32>
    %100 = arith.divf %98, %99 : vector<8x128xf32>
    %101 = vector.extract_strided_slice %100 {offsets = [0, 0], sizes = [8, 32], strides = [1, 1]} : vector<8x128xf32> to vector<8x32xf32>
    %102 = vector.extract_strided_slice %100 {offsets = [0, 32], sizes = [8, 32], strides = [1, 1]} : vector<8x128xf32> to vector<8x32xf32>
    %103 = vector.extract_strided_slice %100 {offsets = [0, 64], sizes = [8, 32], strides = [1, 1]} : vector<8x128xf32> to vector<8x32xf32>
    %cst_27 = arith.constant 2.000000e+00 : f32
    %104 = vector.broadcast %cst_27 : f32 to vector<8x32xf32>
    %105 = arith.mulf %104, %103 : vector<8x32xf32>
    %cst_28 = arith.constant 1.000000e+00 : f32
    %106 = vector.broadcast %cst_28 : f32 to vector<8x32xf32>
    %107 = arith.subf %105, %106 : vector<8x32xf32>
    %108 = vector.extract_strided_slice %100 {offsets = [0, 96], sizes = [8, 32], strides = [1, 1]} : vector<8x128xf32> to vector<8x32xf32>
    %109 = arith.mulf %102, %90 : vector<8x32xf32>
    %110 = arith.mulf %101, %107 : vector<8x32xf32>
    %111 = arith.addf %109, %110 : vector<8x32xf32>
    %112 = math.tanh %111 : vector<8x32xf32>
    %113 = arith.mulf %108, %112 : vector<8x32xf32>
    %114 = vector.extract_strided_slice %5 {offsets = [40, 0], sizes = [8, 128], strides = [1, 1]} : vector<64x128xf32> to vector<8x128xf32>
    %cst_29 = arith.constant dense<0.000000e+00> : vector<8x128xf32>
    %115 = tpu.matmul %113, %6, %cst_29 {dimension_numbers = #tpu.dot_dimension_numbers<[1], [0], [0], [1], [0, 0, 1, 1], [], []>} : vector<8x32xf32>, vector<32x128xf32>, vector<8x128xf32> -> vector<8x128xf32>
    %116 = arith.addf %114, %115 : vector<8x128xf32>
    %117 = arith.negf %116 : vector<8x128xf32>
    %118 = math.exp %117 : vector<8x128xf32>
    %cst_30 = arith.constant 1.000000e+00 : f32
    %119 = vector.broadcast %cst_30 : f32 to vector<8x128xf32>
    %120 = arith.addf %119, %118 : vector<8x128xf32>
    %121 = arith.divf %119, %120 : vector<8x128xf32>
    %122 = vector.extract_strided_slice %121 {offsets = [0, 0], sizes = [8, 32], strides = [1, 1]} : vector<8x128xf32> to vector<8x32xf32>
    %123 = vector.extract_strided_slice %121 {offsets = [0, 32], sizes = [8, 32], strides = [1, 1]} : vector<8x128xf32> to vector<8x32xf32>
    %124 = vector.extract_strided_slice %121 {offsets = [0, 64], sizes = [8, 32], strides = [1, 1]} : vector<8x128xf32> to vector<8x32xf32>
    %cst_31 = arith.constant 2.000000e+00 : f32
    %125 = vector.broadcast %cst_31 : f32 to vector<8x32xf32>
    %126 = arith.mulf %125, %124 : vector<8x32xf32>
    %cst_32 = arith.constant 1.000000e+00 : f32
    %127 = vector.broadcast %cst_32 : f32 to vector<8x32xf32>
    %128 = arith.subf %126, %127 : vector<8x32xf32>
    %129 = vector.extract_strided_slice %121 {offsets = [0, 96], sizes = [8, 32], strides = [1, 1]} : vector<8x128xf32> to vector<8x32xf32>
    %130 = arith.mulf %123, %111 : vector<8x32xf32>
    %131 = arith.mulf %122, %128 : vector<8x32xf32>
    %132 = arith.addf %130, %131 : vector<8x32xf32>
    %133 = math.tanh %132 : vector<8x32xf32>
    %134 = arith.mulf %129, %133 : vector<8x32xf32>
    %135 = vector.extract_strided_slice %5 {offsets = [48, 0], sizes = [8, 128], strides = [1, 1]} : vector<64x128xf32> to vector<8x128xf32>
    %cst_33 = arith.constant dense<0.000000e+00> : vector<8x128xf32>
    %136 = tpu.matmul %134, %6, %cst_33 {dimension_numbers = #tpu.dot_dimension_numbers<[1], [0], [0], [1], [0, 0, 1, 1], [], []>} : vector<8x32xf32>, vector<32x128xf32>, vector<8x128xf32> -> vector<8x128xf32>
    %137 = arith.addf %135, %136 : vector<8x128xf32>
    %138 = arith.negf %137 : vector<8x128xf32>
    %139 = math.exp %138 : vector<8x128xf32>
    %cst_34 = arith.constant 1.000000e+00 : f32
    %140 = vector.broadcast %cst_34 : f32 to vector<8x128xf32>
    %141 = arith.addf %140, %139 : vector<8x128xf32>
    %142 = arith.divf %140, %141 : vector<8x128xf32>
    %143 = vector.extract_strided_slice %142 {offsets = [0, 0], sizes = [8, 32], strides = [1, 1]} : vector<8x128xf32> to vector<8x32xf32>
    %144 = vector.extract_strided_slice %142 {offsets = [0, 32], sizes = [8, 32], strides = [1, 1]} : vector<8x128xf32> to vector<8x32xf32>
    %145 = vector.extract_strided_slice %142 {offsets = [0, 64], sizes = [8, 32], strides = [1, 1]} : vector<8x128xf32> to vector<8x32xf32>
    %cst_35 = arith.constant 2.000000e+00 : f32
    %146 = vector.broadcast %cst_35 : f32 to vector<8x32xf32>
    %147 = arith.mulf %146, %145 : vector<8x32xf32>
    %cst_36 = arith.constant 1.000000e+00 : f32
    %148 = vector.broadcast %cst_36 : f32 to vector<8x32xf32>
    %149 = arith.subf %147, %148 : vector<8x32xf32>
    %150 = vector.extract_strided_slice %142 {offsets = [0, 96], sizes = [8, 32], strides = [1, 1]} : vector<8x128xf32> to vector<8x32xf32>
    %151 = arith.mulf %144, %132 : vector<8x32xf32>
    %152 = arith.mulf %143, %149 : vector<8x32xf32>
    %153 = arith.addf %151, %152 : vector<8x32xf32>
    %154 = math.tanh %153 : vector<8x32xf32>
    %155 = arith.mulf %150, %154 : vector<8x32xf32>
    %156 = vector.extract_strided_slice %5 {offsets = [56, 0], sizes = [8, 128], strides = [1, 1]} : vector<64x128xf32> to vector<8x128xf32>
    %cst_37 = arith.constant dense<0.000000e+00> : vector<8x128xf32>
    %157 = tpu.matmul %155, %6, %cst_37 {dimension_numbers = #tpu.dot_dimension_numbers<[1], [0], [0], [1], [0, 0, 1, 1], [], []>} : vector<8x32xf32>, vector<32x128xf32>, vector<8x128xf32> -> vector<8x128xf32>
    %158 = arith.addf %156, %157 : vector<8x128xf32>
    %159 = arith.negf %158 : vector<8x128xf32>
    %160 = math.exp %159 : vector<8x128xf32>
    %cst_38 = arith.constant 1.000000e+00 : f32
    %161 = vector.broadcast %cst_38 : f32 to vector<8x128xf32>
    %162 = arith.addf %161, %160 : vector<8x128xf32>
    %163 = arith.divf %161, %162 : vector<8x128xf32>
    %164 = vector.extract_strided_slice %163 {offsets = [0, 0], sizes = [8, 32], strides = [1, 1]} : vector<8x128xf32> to vector<8x32xf32>
    %165 = vector.extract_strided_slice %163 {offsets = [0, 32], sizes = [8, 32], strides = [1, 1]} : vector<8x128xf32> to vector<8x32xf32>
    %166 = vector.extract_strided_slice %163 {offsets = [0, 64], sizes = [8, 32], strides = [1, 1]} : vector<8x128xf32> to vector<8x32xf32>
    %cst_39 = arith.constant 2.000000e+00 : f32
    %167 = vector.broadcast %cst_39 : f32 to vector<8x32xf32>
    %168 = arith.mulf %167, %166 : vector<8x32xf32>
    %cst_40 = arith.constant 1.000000e+00 : f32
    %169 = vector.broadcast %cst_40 : f32 to vector<8x32xf32>
    %170 = arith.subf %168, %169 : vector<8x32xf32>
    %171 = vector.extract_strided_slice %163 {offsets = [0, 96], sizes = [8, 32], strides = [1, 1]} : vector<8x128xf32> to vector<8x32xf32>
    %172 = arith.mulf %165, %153 : vector<8x32xf32>
    %173 = arith.mulf %164, %170 : vector<8x32xf32>
    %174 = arith.addf %172, %173 : vector<8x32xf32>
    %175 = math.tanh %174 : vector<8x32xf32>
    %176 = arith.mulf %171, %175 : vector<8x32xf32>
    %c0_41 = arith.constant 0 : index
    %c0_42 = arith.constant 0 : index
    %177 = vector.load %arg4[%c0_41, %c0_42] : memref<32x2xf32, #tpu.memory_space<vmem>>, vector<32x2xf32>
    %cst_43 = arith.constant dense<0.000000e+00> : vector<8x2xf32>
    %178 = tpu.matmul %176, %177, %cst_43 {dimension_numbers = #tpu.dot_dimension_numbers<[1], [0], [0], [1], [0, 0, 1, 1], [], []>} : vector<8x32xf32>, vector<32x2xf32>, vector<8x2xf32> -> vector<8x2xf32>
    %c0_44 = arith.constant 0 : index
    %c0_45 = arith.constant 0 : index
    %179 = vector.load %arg5[%c0_44, %c0_45] : memref<1x2xf32, #tpu.memory_space<vmem>>, vector<1x2xf32>
    %180 = vector.broadcast %179 : vector<1x2xf32> to vector<8x2xf32>
    %181 = arith.addf %178, %180 : vector<8x2xf32>
    %cst_46 = arith.constant dense<0xFF800000> : vector<8xf32>
    %182 = vector.multi_reduction <maximumf>, %181, %cst_46 [1] : vector<8x2xf32> to vector<8xf32>
    %183 = vector.shape_cast %182 : vector<8xf32> to vector<8x1xf32>
    %184 = vector.broadcast %183 : vector<8x1xf32> to vector<8x2xf32>
    %185 = arith.subf %181, %184 : vector<8x2xf32>
    %186 = math.exp %185 : vector<8x2xf32>
    %cst_47 = arith.constant dense<0.000000e+00> : vector<8xf32>
    %187 = vector.multi_reduction <add>, %186, %cst_47 [1] : vector<8x2xf32> to vector<8xf32>
    %188 = vector.shape_cast %187 : vector<8xf32> to vector<8x1xf32>
    %189 = tpu.reciprocal %188 : vector<8x1xf32> -> vector<8x1xf32>
    %190 = vector.broadcast %189 : vector<8x1xf32> to vector<8x2xf32>
    %191 = arith.mulf %186, %190 : vector<8x2xf32>
    %c0_48 = arith.constant 0 : index
    %c0_49 = arith.constant 0 : index
    %192 = vector.load %arg6[%c0_48, %c0_49] : memref<8x2xf32, #tpu.memory_space<vmem>>, vector<8x2xf32>
    tpu.vector_store %arg6[%c0_48, %c0_49], %191 {strides = array<i32>} : memref<8x2xf32, #tpu.memory_space<vmem>>, vector<8x2xf32>,
    return
  }
}

</mosaic_0001>

<bundles_post_ra>
// kernel: gru_rnn_forward.1
= control target key start
LH: loop header
LB: loop body
LE: loop exit
PB: predicated region body
PF: predicated region fallthrough
CT: control target
= control target key end

     0   :  { %vm40_vm0 = vcmask 130048   ;;  %v1403_v0 = vmov 0.0|0.0   ;;  %vm1404_vm1 = vmmov 0   ;;  %v1405_v4 = vmov 0.0   ;;  %s1406_s13 = smov 64   ;;  %s1636_s1 = inlined_call_operand.vmem [shape: f32[16,128], index: 1, kind: input, shape index: {}]   ;;  %s1637_s2 = inlined_call_operand.vmem [shape: f32[32,128], index: 2, kind: input, shape index: {}]   ;;  %s1638_s0 = inlined_call_operand.vmem [shape: f32[64,16], index: 0, kind: input, shape index: {}]   ;;  %s1639_s3 = inlined_call_operand.vmem [shape: f32[1,128], index: 3, kind: input, shape index: {}]   ;;  %s1640_s4 = inlined_call_operand.vmem [shape: f32[32,2], index: 4, kind: input, shape index: {}]   ;;  %s1641_s5 = inlined_call_operand.vmem [shape: f32[1,2], index: 5, kind: input, shape index: {}]   ;;  %s1642_s6 = inlined_call_operand.vmem [shape: f32[8,2], index: 6, kind: output, shape index: {}]  }
   0x1   :  { %1292 = vmatprep.subr.bf16.mxu1 %v1403_v0  ;;  %v31_v1 = vld [vmem:[%s1636_s1] sm:$0xff]  ;;  %v32_v2 = vld [vmem:[%s1636_s1 + $0x8] sm:$0xff]  ;;  %1197 = vmatprep.mubr.msk.f32.mxu1 %vm1404_vm1, %v1405_v4  ;;  %v172_v9 = vld [vmem:[%s1637_s2 + $0x10] sm:$0xff]  ;;  %vm174_vm2 = vcmask 261120   ;;  %vm1067_vm3 = vcmask 15360  }
   0x2   :  { %v170_v3 = vld [vmem:[%s1637_s2] sm:$0xff]  ;;  %v1288_v5 = vpack.c.bf16 %v32_v2, %v31_v1  ;;  %v171_v6 = vld [vmem:[%s1637_s2 + $0x8] sm:$0xff]  ;;  %v173_v10 = vld [vmem:[%s1637_s2 + $0x18] sm:$0xff] }
   0x3   :  { %v23_v7 = vld [vmem:[%s1638_s0] sm:$0xff]  ;;  %v1461_v8 = vpack.c.bf16 %v171_v6, %v170_v3  ;;  %v24_v11 = vld [vmem:[%s1638_s0 + $0x8] sm:$0xff]  ;;  %v1474_v12 = vpack.c.bf16 %v173_v10, %v172_v9  ;;  %v25_v50 = vld [vmem:[%s1638_s0 + $0x10] sm:$0xff] }
   0x4   :  { %1177 = vmatprep.mubr.msk.f32.mxu0 %vm40_vm0, %v23_v7  ;;  %1289 = vmatprep.subr.bf16.mxu0 %v1288_v5  ;;  %v1495_v13 = vld [vmem:[%s1639_s3] ss:$0 sm:$0xff]  ;;  %s1407_s3 = smov 32   ;;  %v26_v51 = vld [vmem:[%s1638_s0 + $0x18] sm:$0xff]  ;;  %v28_v53 = vld [vmem:[%s1638_s0 + $0x28] sm:$0xff] }
   0x5   :  { %1294 = vmatpush3.bf16.msra.mxu1 %v1461_v8  ;;  %1291 = vmatpush3.bf16.msra.mxu0 %v1288_v5  ;;  %v27_v52 = vld [vmem:[%s1638_s0 + $0x20] sm:$0xff]  ;;  %v29_v54 = vld [vmem:[%s1638_s0 + $0x30] sm:$0xff]  ;;  %v30_v55 = vld [vmem:[%s1638_s0 + $0x38] sm:$0xff] }
   0x6   :  { %1295 = vmatprep.subr.bf16.mxu1 %v1403_v0  ;;  %1304 = vmatprep.subr.bf16.mxu0 %v1403_v0 }
   0x8   :  { %1178 = vmatmul.mubr.msk.f32.vlgmr.msra.gmra.mrb[0].mxu0 %vm40_vm0, %v24_v11 }
   0x9   :  { %1297 = vmatpush3.bf16.msra.mxu1 %v1474_v12  ;;  %1306 = vmatpush3.bf16.msra.mxu0 %v1461_v8 }
   0xa   :  { %1298 = vmatprep.subr.bf16.mxu1 %v1403_v0  ;;  %1307 = vmatprep.subr.bf16.mxu0 %v1403_v0 }
   0xb   :  { %1180 = vmatprep.mubr.msk.f32.mxu0 %vm40_vm0, %v25_v50 }
   0xc   :  { %1198 = vmatmul.mubr.f32.vlgmr.msra.gmra.mrb[0].mxu1 %v1405_v4  ;;  %1181 = vmatmul.mubr.msk.f32.gmra.mrb[2].mxu0 %vm40_vm0, %v26_v51 }
   0xd   :  { %1300 = vmatpush3.bf16.msra.mxu1 %v1461_v8  ;;  %1208 = vmatprep.mubr.msk.f32.mxu1 %vm1404_vm1, %v1405_v4 }
   0xe   :  { %1301 = vmatprep.subr.bf16.mxu1 %v1403_v0  ;;  %1309 = vmatpush3.bf16.msra.mxu0 %v1474_v12 }
   0xf   :  { %1316 = vmatprep.subr.bf16.mxu0 %v1403_v0  ;;  %1183 = vmatprep.mubr.msk.f32.mxu0 %vm40_vm0, %v27_v52 }
  0x10   :  { %1184 = vmatmul.mubr.msk.f32.gmra.mrb[4].mxu0 %vm40_vm0, %v28_v53 }
  0x11   :  { %1303 = vmatpush3.bf16.msra.mxu1 %v1474_v12  ;;  %1186 = vmatprep.mubr.msk.f32.mxu0 %vm40_vm0, %v29_v54 }
  0x12   :  { %1310 = vmatprep.subr.bf16.mxu1 %v1403_v0 }
  0x14   :  { %1187 = vmatmul.mubr.msk.f32.gmra.mrb[6].mxu0 %vm40_vm0, %v30_v55 }
  0x15   :  { %1219 = vmatprep.mubr.msk.f32.mxu0 %vm1404_vm1, %v1405_v4 }
  0xdb   :  { %v1179_v14 = vpop.f32.mrb[0].mxu0 }
  0xdc   :  { %v131_v15 = vpop.f32.mrb[1].mxu0  ;;  %v137_v35 = vadd.f32 %v1179_v14, %v1495_v13 }
  0xdd   :  { %v132_v16 = vadd.f32 %v1495_v13, %v131_v15 }
  0xdf   :  { %v244_v17 = vpop.f32.mrb[0].mxu1  ;;  %v1182_v59 = vpop.f32.mrb[2].mxu0 }
  0xe0   :  { %v248_v18 = vadd.f32 %v244_v17, %v132_v16  ;;  %v1199_v19 = vpop.f32.mrb[1].mxu1  ;;  %v141_v60 = vpop.f32.mrb[3].mxu0 }
  0xe1   :  { %v142_v3 = vadd.f32 %v1495_v13, %v141_v60 }
  0xe2   :  { %v1093_v20 = vmul.f32 -1.442695, %v248_v18 }
  0xe3   :  { %v1540_v61 = vpop.f32.mrb[4].mxu0 }
  0xe4   :  { %1351 = vpow2.f32 %v1093_v20  ;;  %v1542_v62 = vpop.f32.mrb[5].mxu0 }
  0xe7   :  { %v1544_v63 = vpop.f32.mrb[6].mxu0 }
  0xe8   :  { %v1546_v1 = vpop.f32.mrb[7].mxu0 }
  0xee   :  { %v1352_v21 = vpop.eup %1351 }
  0xef   :  { %v252_v22 = vadd.f32 1.0, %v1352_v21 }
  0xf1   :  { %1353 = vrcp.f32 %v252_v22 }
  0xfb   :  { %v1354_v23 = vpop.eup %1353 }
  0xfc   :  { %v255_v24 = vmul.f32 2.0, %v1354_v23  ;;  %v257_v28 = vmul.f32 0.0, %v1354_v23 }
  0xfe   :  { %v1094_v25 = vadd.f32 -1.0, %v255_v24 }
 0x100   :  { %259 = vrot.lane.b32.xlu0 %v1094_v25, %s1406_s13 }
 0x172   :  { %v260_v26 = vpop.permute.xlu0 %259 }
 0x173   :  { %v262_v27 = vmul.f32 %v1354_v23, %v260_v26  ;;  %v147_v26 = vadd.f32 %v1182_v59, %v1495_v13 }
 0x175   :  { %264 = vrot.lane.b32.xlu0 %v262_v27, %s1407_s3 }
 0x1e7   :  { %v265_v29 = vpop.permute.xlu0 %264 }
 0x1e8   :  { %v267_v30 = vadd.f32 %v265_v29, %v257_v28 }
 0x1ea   :  { %1355 = vtanh.f32 %v267_v30 }
 0x1f4   :  { %v1356_v31 = vpop.eup %1355 }
 0x1f5   :  { %270 = vrot.lane.b32.xlu1 %v1356_v31, %s1406_s13 }
 0x267   :  { %v271_v32 = vpop.permute.xlu1 %270 }
 0x268   :  { %v273_v33 = vmul.f32 %v1354_v23, %v271_v32 }
 0x26a   :  { %275 = vrot.lane.b32.xlu1 %v273_v33, %s1407_s3 }
 0x2dc   :  { %v276_v34 = vpop.permute.xlu1 %275 }
 0x2dd   :  { %1209 = vmatmul.mubr.msk.f32.vlgmr.msra.gmra.mrb[2].mxu1 %vm174_vm2, %v276_v34 }
 0x2de   :  { %1312 = vmatpush3.bf16.msra.mxu1 %v1461_v8  ;;  %1230 = vmatprep.mubr.msk.f32.mxu1 %vm1404_vm1, %v1405_v4 }
 0x2df   :  { %1313 = vmatprep.subr.bf16.mxu1 %v1403_v0 }
 0x2e2   :  { %1315 = vmatpush3.bf16.msra.mxu1 %v1474_v12 }
 0x2e3   :  { %1322 = vmatprep.subr.bf16.mxu1 %v1403_v0 }
 0x3b0   :  { %v345_v36 = vpop.f32.mrb[2].mxu1 }
 0x3b1   :  { %v349_v37 = vadd.f32 %v345_v36, %v137_v35  ;;  %v1210_v38 = vpop.f32.mrb[3].mxu1 }
 0x3b3   :  { %v1096_v39 = vmul.f32 -1.442695, %v349_v37 }
 0x3b5   :  { %1357 = vpow2.f32 %v1096_v39 }
 0x3bf   :  { %v1358_v40 = vpop.eup %1357 }
 0x3c0   :  { %v353_v41 = vadd.f32 1.0, %v1358_v40 }
 0x3c2   :  { %1359 = vrcp.f32 %v353_v41 }
 0x3cc   :  { %v1360_v42 = vpop.eup %1359 }
 0x3cd   :  { %v356_v43 = vmul.f32 2.0, %v1360_v42  ;;  %v358_v47 = vmul.f32 %v1360_v42, %v267_v30 }
 0x3cf   :  { %v1097_v44 = vadd.f32 -1.0, %v356_v43 }
 0x3d1   :  { %360 = vrot.lane.b32.xlu0 %v1097_v44, %s1406_s13 }
 0x443   :  { %v361_v45 = vpop.permute.xlu0 %360 }
 0x444   :  { %v363_v46 = vmul.f32 %v1360_v42, %v361_v45  ;;  %v152_v45 = vadd.f32 %v1495_v13, %v1542_v62 }
 0x446   :  { %365 = vrot.lane.b32.xlu1 %v363_v46, %s1407_s3 }
 0x4b8   :  { %v366_v48 = vpop.permute.xlu1 %365 }
 0x4b9   :  { %v368_v49 = vadd.f32 %v366_v48, %v358_v47 }
 0x4bb   :  { %1361 = vtanh.f32 %v368_v49 }
 0x4c5   :  { %v1362_v56 = vpop.eup %1361 }
 0x4c6   :  { %371 = vrot.lane.b32.xlu0 %v1362_v56, %s1406_s13 }
 0x538   :  { %v372_v57 = vpop.permute.xlu0 %371 }
 0x539   :  { %v374_v58 = vmul.f32 %v1360_v42, %v372_v57 }
 0x53b   :  { %376 = vrot.lane.b32.xlu1 %v374_v58, %s1407_s3 }
 0x5ad   :  { %v377_v2 = vpop.permute.xlu1 %376 }
 0x5ae   :  { %1220 = vmatmul.mubr.msk.f32.vlgmr.msra.gmra.mrb[8].mxu0 %vm174_vm2, %v377_v2 }
 0x5af   :  { %1318 = vmatpush3.bf16.msra.mxu0 %v1461_v8  ;;  %1241 = vmatprep.mubr.msk.f32.mxu0 %vm1404_vm1, %v1405_v4 }
 0x5b0   :  { %1319 = vmatprep.subr.bf16.mxu0 %v1403_v0 }
 0x5b3   :  { %1321 = vmatpush3.bf16.msra.mxu0 %v1474_v12 }
 0x5b4   :  { %1328 = vmatprep.subr.bf16.mxu0 %v1403_v0 }
 0x681   :  { %v446_v5 = vpop.f32.mrb[8].mxu0 }
 0x682   :  { %v450_v6 = vadd.f32 %v446_v5, %v142_v3  ;;  %v1221_v7 = vpop.f32.mrb[9].mxu0  ;;  %v157_v5 = vadd.f32 %v1540_v61, %v1495_v13 }
 0x684   :  { %v1099_v9 = vmul.f32 -1.442695, %v450_v6 }
 0x686   :  { %1363 = vpow2.f32 %v1099_v9 }
 0x690   :  { %v1364_v10 = vpop.eup %1363 }
 0x691   :  { %v454_v11 = vadd.f32 1.0, %v1364_v10 }
 0x693   :  { %1365 = vrcp.f32 %v454_v11 }
 0x69d   :  { %v1366_v14 = vpop.eup %1365 }
 0x69e   :  { %v457_v15 = vmul.f32 2.0, %v1366_v14  ;;  %v459_v19 = vmul.f32 %v1366_v14, %v368_v49 }
 0x6a0   :  { %v1100_v16 = vadd.f32 -1.0, %v457_v15 }
 0x6a2   :  { %461 = vrot.lane.b32.xlu0 %v1100_v16, %s1406_s13 }
 0x714   :  { %v462_v17 = vpop.permute.xlu0 %461 }
 0x715   :  { %v464_v18 = vmul.f32 %v1366_v14, %v462_v17 }
 0x717   :  { %466 = vrot.lane.b32.xlu1 %v464_v18, %s1407_s3 }
 0x789   :  { %v467_v20 = vpop.permute.xlu1 %466 }
 0x78a   :  { %v469_v21 = vadd.f32 %v467_v20, %v459_v19 }
 0x78c   :  { %1367 = vtanh.f32 %v469_v21 }
 0x796   :  { %v1368_v22 = vpop.eup %1367 }
 0x797   :  { %472 = vrot.lane.b32.xlu0 %v1368_v22, %s1406_s13 }
 0x809   :  { %v473_v23 = vpop.permute.xlu0 %472 }
 0x80a   :  { %v475_v24 = vmul.f32 %v1366_v14, %v473_v23 }
 0x80c   :  { %477 = vrot.lane.b32.xlu1 %v475_v24, %s1407_s3  ;;  %v162_v24 = vadd.f32 %v1495_v13, %v1546_v1 }
 0x87e   :  { %v478_v25 = vpop.permute.xlu1 %477 }
 0x87f   :  { %1231 = vmatmul.mubr.msk.f32.vlgmr.msra.gmra.mrb[4].mxu1 %vm174_vm2, %v478_v25 }
 0x880   :  { %1324 = vmatpush3.bf16.msra.mxu1 %v1461_v8  ;;  %1252 = vmatprep.mubr.msk.f32.mxu1 %vm1404_vm1, %v1405_v4 }
 0x881   :  { %1325 = vmatprep.subr.bf16.mxu1 %v1403_v0 }
 0x884   :  { %1327 = vmatpush3.bf16.msra.mxu1 %v1474_v12 }
 0x885   :  { %1334 = vmatprep.subr.bf16.mxu1 %v1403_v0 }
 0x952   :  { %v547_v27 = vpop.f32.mrb[4].mxu1 }
 0x953   :  { %v551_v28 = vadd.f32 %v547_v27, %v147_v26  ;;  %v1232_v29 = vpop.f32.mrb[5].mxu1 }
 0x955   :  { %v1102_v30 = vmul.f32 -1.442695, %v551_v28 }
 0x957   :  { %1369 = vpow2.f32 %v1102_v30 }
 0x961   :  { %v1370_v31 = vpop.eup %1369 }
 0x962   :  { %v555_v32 = vadd.f32 1.0, %v1370_v31 }
 0x964   :  { %1371 = vrcp.f32 %v555_v32 }
 0x96e   :  { %v1372_v33 = vpop.eup %1371 }
 0x96f   :  { %v558_v34 = vmul.f32 2.0, %v1372_v33  ;;  %v560_v38 = vmul.f32 %v1372_v33, %v469_v21 }
 0x971   :  { %v1103_v35 = vadd.f32 -1.0, %v558_v34 }
 0x973   :  { %562 = vrot.lane.b32.xlu0 %v1103_v35, %s1406_s13 }
 0x9e5   :  { %v563_v36 = vpop.permute.xlu0 %562 }
 0x9e6   :  { %v565_v37 = vmul.f32 %v1372_v33, %v563_v36 }
 0x9e8   :  { %567 = vrot.lane.b32.xlu1 %v565_v37, %s1407_s3 }
 0xa5a   :  { %v568_v39 = vpop.permute.xlu1 %567 }
 0xa5b   :  { %v570_v40 = vadd.f32 %v568_v39, %v560_v38 }
 0xa5d   :  { %1373 = vtanh.f32 %v570_v40 }
 0xa67   :  { %v1374_v41 = vpop.eup %1373 }
 0xa68   :  { %573 = vrot.lane.b32.xlu0 %v1374_v41, %s1406_s13  ;;  %v167_v41 = vadd.f32 %v1544_v63, %v1495_v13  ;;  %v981_v63 = vld [vmem:[%s1640_s4] sm:$0xff] }
 0xada   :  { %v574_v42 = vpop.permute.xlu0 %573 }
 0xadb   :  { %v576_v43 = vmul.f32 %v1372_v33, %v574_v42 }
 0xadd   :  { %578 = vrot.lane.b32.xlu1 %v576_v43, %s1407_s3 }
 0xb4f   :  { %v579_v44 = vpop.permute.xlu1 %578 }
 0xb50   :  { %1242 = vmatmul.mubr.msk.f32.vlgmr.msra.gmra.mrb[10].mxu0 %vm174_vm2, %v579_v44 }
 0xb51   :  { %1330 = vmatpush3.bf16.msra.mxu0 %v1461_v8  ;;  %1263 = vmatprep.mubr.msk.f32.mxu0 %vm1404_vm1, %v1405_v4 }
 0xb52   :  { %1331 = vmatprep.subr.bf16.mxu0 %v1403_v0 }
 0xb55   :  { %1333 = vmatpush3.bf16.msra.mxu0 %v1474_v12 }
 0xb56   :  { %1340 = vmatprep.subr.bf16.mxu0 %v1403_v0 }
 0xc23   :  { %v648_v46 = vpop.f32.mrb[10].mxu0 }
 0xc24   :  { %v652_v47 = vadd.f32 %v648_v46, %v152_v45  ;;  %v1243_v48 = vpop.f32.mrb[11].mxu0 }
 0xc26   :  { %v1105_v49 = vmul.f32 -1.442695, %v652_v47 }
 0xc28   :  { %1375 = vpow2.f32 %v1105_v49 }
 0xc32   :  { %v1376_v50 = vpop.eup %1375 }
 0xc33   :  { %v656_v51 = vadd.f32 1.0, %v1376_v50 }
 0xc35   :  { %1377 = vrcp.f32 %v656_v51 }
 0xc3f   :  { %v1378_v52 = vpop.eup %1377 }
 0xc40   :  { %v659_v53 = vmul.f32 2.0, %v1378_v52  ;;  %v661_v57 = vmul.f32 %v1378_v52, %v570_v40 }
 0xc42   :  { %v1106_v54 = vadd.f32 -1.0, %v659_v53 }
 0xc44   :  { %663 = vrot.lane.b32.xlu0 %v1106_v54, %s1406_s13 }
 0xcb6   :  { %v664_v55 = vpop.permute.xlu0 %663 }
 0xcb7   :  { %v666_v56 = vmul.f32 %v1378_v52, %v664_v55  ;;  %v982_v55 = vld [vmem:[%s1640_s4 + $0x8] sm:$0xff] }
 0xcb9   :  { %668 = vrot.lane.b32.xlu1 %v666_v56, %s1407_s3  ;;  %v983_v56 = vld [vmem:[%s1640_s4 + $0x10] sm:$0xff] }
 0xd2b   :  { %v669_v58 = vpop.permute.xlu1 %668 }
 0xd2c   :  { %v671_v59 = vadd.f32 %v669_v58, %v661_v57  ;;  %v1341_v57 = vpack.c.bf16 %v982_v55, %v981_v63  ;;  %v984_v58 = vld [vmem:[%s1640_s4 + $0x18] sm:$0xff] }
 0xd2e   :  { %1379 = vtanh.f32 %v671_v59 }
 0xd38   :  { %v1380_v60 = vpop.eup %1379 }
 0xd39   :  { %674 = vrot.lane.b32.xlu0 %v1380_v60, %s1406_s13 }
 0xdab   :  { %v675_v62 = vpop.permute.xlu0 %674 }
 0xdac   :  { %v677_v2 = vmul.f32 %v1378_v52, %v675_v62 }
 0xdae   :  { %679 = vrot.lane.b32.xlu1 %v677_v2, %s1407_s3 }
 0xe20   :  { %v680_v3 = vpop.permute.xlu1 %679 }
 0xe21   :  { %1253 = vmatmul.mubr.msk.f32.vlgmr.msra.gmra.mrb[6].mxu1 %vm174_vm2, %v680_v3 }
 0xe22   :  { %1336 = vmatpush3.bf16.msra.mxu1 %v1461_v8  ;;  %1274 = vmatprep.mubr.msk.f32.mxu1 %vm1404_vm1, %v1405_v4 }
 0xe23   :  { %1337 = vmatprep.subr.bf16.mxu1 %v1403_v0 }
 0xe26   :  { %1339 = vmatpush3.bf16.msra.mxu1 %v1474_v12 }
 0xef4   :  { %v749_v6 = vpop.f32.mrb[6].mxu1 }
 0xef5   :  { %v753_v7 = vadd.f32 %v749_v6, %v157_v5  ;;  %v1254_v9 = vpop.f32.mrb[7].mxu1  ;;  %v1116_v5 = vld [vmem:[%s1641_s5] ss:$0 sm:$0xff] }
 0xef7   :  { %v1108_v10 = vmul.f32 -1.442695, %v753_v7 }
 0xef9   :  { %1381 = vpow2.f32 %v1108_v10 }
 0xf03   :  { %v1382_v11 = vpop.eup %1381 }
 0xf04   :  { %v757_v14 = vadd.f32 1.0, %v1382_v11 }
 0xf06   :  { %1383 = vrcp.f32 %v757_v14 }
 0xf10   :  { %v1384_v15 = vpop.eup %1383 }
 0xf11   :  { %v760_v8 = vmul.f32 2.0, %v1384_v15  ;;  %v762_v12 = vmul.f32 %v1384_v15, %v671_v59  ;;  %v1344_v59 = vpack.c.bf16 %v984_v58, %v983_v56 }
 0xf13   :  { %v1109_v16 = vadd.f32 -1.0, %v760_v8 }
 0xf15   :  { %764 = vrot.lane.b32.xlu0 %v1109_v16, %s1406_s13 }
 0xf87   :  { %v765_v17 = vpop.permute.xlu0 %764 }
 0xf88   :  { %v767_v18 = vmul.f32 %v1384_v15, %v765_v17 }
 0xf8a   :  { %769 = vrot.lane.b32.xlu1 %v767_v18, %s1407_s3 }
 0xffc   :  { %v770_v19 = vpop.permute.xlu1 %769 }
 0xffd   :  { %v772_v61 = vadd.f32 %v770_v19, %v762_v12 }
 0xfff   :  { %1385 = vtanh.f32 %v772_v61 }
0x1009   :  { %v1386_v20 = vpop.eup %1385 }
0x100a   :  { %775 = vrot.lane.b32.xlu0 %v1386_v20, %s1406_s13 }
0x107c   :  { %v776_v21 = vpop.permute.xlu0 %775 }
0x107d   :  { %v778_v22 = vmul.f32 %v1384_v15, %v776_v21 }
0x107f   :  { %780 = vrot.lane.b32.xlu1 %v778_v22, %s1407_s3 }
0x10f1   :  { %v781_v23 = vpop.permute.xlu1 %780 }
0x10f2   :  { %1264 = vmatmul.mubr.msk.f32.vlgmr.msra.gmra.mrb[12].mxu0 %vm174_vm2, %v781_v23 }
0x10f3   :  { %1285 = vmatprep.mubr.msk.f32.mxu0 %vm1404_vm1, %v1405_v4  ;;  %1342 = vmatpush3.bf16.msra.mxu0 %v1341_v57 }
0x10f4   :  { %1343 = vmatprep.subr.bf16.mxu0 %v1403_v0 }
0x10f7   :  { %1345 = vmatpush3.bf16.msra.mxu0 %v1344_v59 }
0x11c5   :  { %v850_v25 = vpop.f32.mrb[12].mxu0 }
0x11c6   :  { %v854_v26 = vadd.f32 %v850_v25, %v162_v24  ;;  %v1265_v27 = vpop.f32.mrb[13].mxu0 }
0x11c8   :  { %v1111_v28 = vmul.f32 -1.442695, %v854_v26 }
0x11ca   :  { %1387 = vpow2.f32 %v1111_v28 }
0x11d4   :  { %v1388_v29 = vpop.eup %1387 }
0x11d5   :  { %v858_v30 = vadd.f32 1.0, %v1388_v29 }
0x11d7   :  { %1389 = vrcp.f32 %v858_v30 }
0x11e1   :  { %v1390_v31 = vpop.eup %1389 }
0x11e2   :  { %v861_v32 = vmul.f32 2.0, %v1390_v31  ;;  %v863_v4 = vmul.f32 %v1390_v31, %v772_v61 }
0x11e4   :  { %v1112_v33 = vadd.f32 -1.0, %v861_v32 }
0x11e6   :  { %865 = vrot.lane.b32.xlu0 %v1112_v33, %s1406_s13 }
0x1258   :  { %v866_v34 = vpop.permute.xlu0 %865 }
0x1259   :  { %v868_v35 = vmul.f32 %v1390_v31, %v866_v34 }
0x125b   :  { %870 = vrot.lane.b32.xlu1 %v868_v35, %s1407_s3 }
0x12cd   :  { %v871_v36 = vpop.permute.xlu1 %870 }
0x12ce   :  { %v873_v1 = vadd.f32 %v871_v36, %v863_v4 }
0x12d0   :  { %1391 = vtanh.f32 %v873_v1 }
0x12da   :  { %v1392_v37 = vpop.eup %1391 }
0x12db   :  { %876 = vrot.lane.b32.xlu0 %v1392_v37, %s1406_s13 }
0x134d   :  { %v877_v38 = vpop.permute.xlu0 %876 }
0x134e   :  { %v879_v39 = vmul.f32 %v1390_v31, %v877_v38 }
0x1350   :  { %881 = vrot.lane.b32.xlu1 %v879_v39, %s1407_s3 }
0x13c2   :  { %v882_v40 = vpop.permute.xlu1 %881 }
0x13c3   :  { %1275 = vmatmul.mubr.msk.f32.vlgmr.msra.gmra.mrb[8].mxu1 %vm174_vm2, %v882_v40 }
0x1496   :  { %v951_v42 = vpop.f32.mrb[8].mxu1 }
0x1497   :  { %v955_v43 = vadd.f32 %v951_v42, %v167_v41  ;;  %v1276_v44 = vpop.f32.mrb[9].mxu1 }
0x1499   :  { %v1114_v45 = vmul.f32 -1.442695, %v955_v43 }
0x149b   :  { %1393 = vpow2.f32 %v1114_v45 }
0x14a5   :  { %v1394_v46 = vpop.eup %1393 }
0x14a6   :  { %v959_v47 = vadd.f32 1.0, %v1394_v46 }
0x14a8   :  { %1395 = vrcp.f32 %v959_v47 }
0x14b2   :  { %v1396_v48 = vpop.eup %1395 }
0x14b3   :  { %v962_v49 = vmul.f32 2.0, %v1396_v48  ;;  %v964_v53 = vmul.f32 %v1396_v48, %v873_v1 }
0x14b5   :  { %v1115_v50 = vadd.f32 -1.0, %v962_v49 }
0x14b7   :  { %966 = vrot.lane.b32.xlu0 %v1115_v50, %s1406_s13 }
0x1529   :  { %v967_v51 = vpop.permute.xlu0 %966 }
0x152a   :  { %v969_v52 = vmul.f32 %v1396_v48, %v967_v51 }
0x152c   :  { %971 = vrot.lane.b32.xlu1 %v969_v52, %s1407_s3 }
0x159e   :  { %v972_v54 = vpop.permute.xlu1 %971 }
0x159f   :  { %v974_v13 = vadd.f32 %v972_v54, %v964_v53 }
0x15a1   :  { %1397 = vtanh.f32 %v974_v13 }
0x15ab   :  { %v1398_v60 = vpop.eup %1397 }
0x15ac   :  { %977 = vrot.lane.b32.xlu0 %v1398_v60, %s1406_s13 }
0x161e   :  { %v978_v62 = vpop.permute.xlu0 %977 }
0x161f   :  { %v980_v2 = vmul.f32 %v1396_v48, %v978_v62 }
0x1621   :  { %993 = vrot.lane.b32.xlu1 %v980_v2, %s1407_s3 }
0x1693   :  { %v994_v3 = vpop.permute.xlu1 %993 }
0x1694   :  { %1286 = vmatmul.mubr.msk.f32.vlgmr.msra.gmra.mrb[14].mxu0 %vm174_vm2, %v994_v3 }
0x1767   :  { %v1063_v6 = vpop.f32.mrb[14].mxu0 }
0x1768   :  { %v1064_v7 = vadd.f32 %v1116_v5, %v1063_v6  ;;  %v1287_v9 = vpop.f32.mrb[15].mxu0 }
0x176a   :  { %v1068_v0 = vsel %vm1067_vm3, %v1064_v7, -inf }
0x176b   :  { %1069 = vmax.xlane.f32.xlu0 %v1068_v0 }
0x17f8   :  { %v1070_v10 = vpop.xlane.xlu0 %1069 }
0x17f9   :  { %v1071_v11 = vsub.f32 %v1064_v7, %v1070_v10 }
0x17fb   :  { %v1072_v14 = vmul.f32 1.442695, %v1071_v11 }
0x17fd   :  { %1399 = vpow2.f32 %v1072_v14 }
0x1807   :  { %v1400_v15 = vpop.eup %1399 }
0x1808   :  { %v1074_v8 = vsel %vm1067_vm3, %v1400_v15, 0.0 }
0x1809   :  { %1075 = vadd.xlane.f32.xlu1 %v1074_v8 }
0x1896   :  { %v1076_v16 = vpop.xlane.xlu1 %1075 }
0x1897   :  { %1401 = vrcp.f32 %v1076_v16 }
0x18a1   :  { %v1402_v17 = vpop.eup %1401 }
0x18a2   :  { %v1078_v18 = vmul.f32 %v1402_v17, %v1400_v15 }
0x18a4   :  { %1079 = vst.msk [vmem:[%s1642_s6] sm:$0xff] %vm1067_vm3, %v1078_v18 }

</bundles_post_ra>
